<compile_context>
chip_gen: v6e
topology: v6e:2x2x1
jax: 0.10.0
libtpu: 0.0.40
codegen_flags: <defaults>
</compile_context>

<pallas_src>
import functools

import jax
import jax.numpy as jnp
from jax.experimental import pallas as pl
from jax.experimental.pallas import tpu as pltpu


def _upscale_kernel(x_ref, a_ref, b_ref, o_ref, *, cp):
    """One grid step: upsample `cp` channel-plane tiles.

    x_ref: (cp, th, tw)        input tile
    a_ref: (th*f, th)          row-expansion matrix (entries 0 / 1)
    b_ref: (tw, tw*f)          col-expansion matrix (entries 0 / gain)
    o_ref: (cp, th*f, tw*f)    output tile
    """
    a = a_ref[...]
    b = b_ref[...]
    # Static unroll over the small plane-block axis; each iteration is two plain
    # 2-D MXU matmuls with f32 accumulation (no batched dots, no transposes).
    for c in range(cp):
        y = jnp.dot(x_ref[c], b, preferred_element_type=jnp.float32)   # (th, tw*f)
        o = jnp.dot(a, y, preferred_element_type=jnp.float32)          # (th*f, tw*f)
        o_ref[c] = o.astype(o_ref.dtype)


def _largest_divisor_leq(n, target, quantum=1):
    """Largest divisor of n that is <= target and a multiple of `quantum`.

    Falls back to the full dimension n (always a legal Pallas block)."""
    if n <= target:
        return n
    for d in range(min(n, target), 0, -1):
        if n % d == 0 and d % quantum == 0:
            return d
    return n


def upscale2d_pallas(x, factor=2, gain=1.0, *,
                     plane_block=None, row_block=None, col_block=None,
                     vmem_budget_bytes=8 * 1024 * 1024):
    """Nearest-neighbor 2x/3x/... upsample with gain.  x: (N, C, H, W)."""
    assert x.ndim == 4, "expected NCHW input"
    f = int(factor)
    if f <= 1:
        # Module degenerates to a (possibly trivial) elementwise scale.
        return x * jnp.asarray(gain, x.dtype) if gain != 1.0 else x

    N, C, H, W = x.shape
    P = N * C
    Hf, Wf = H * f, W * f
    dt = x.dtype
    esize = jnp.dtype(dt).itemsize

    # ---- tile selection (keep blocks comfortably inside the scoped-VMEM default
    # on v5e/v6e/v7x while staying lane-dense and 8/128-aligned). ----
    if col_block is None:
        tw = _largest_divisor_leq(W, 512, 128)            # lane tile (or full W)
    else:
        tw = col_block
    if row_block is None:
        th_target = max(8, (1 << 20) // max(1, f * tw * f * esize))
        th = _largest_divisor_leq(H, th_target, 8)        # sublane tile (or full H)
    else:
        th = row_block
    per_plane_block = 2 * (th * tw + (th * f) * (tw * f)) * esize  # double-buffered
    if plane_block is None:
        cp_max = max(1, min(8, vmem_budget_bytes // max(1, per_plane_block)))
        cp = _largest_divisor_leq(P, cp_max, 1)
    else:
        cp = plane_block
    assert P % cp == 0 and H % th == 0 and W % tw == 0

    # ---- expansion matrices (tiny, built once per call; gain folded into Bm). ----
    rows_out = jnp.arange(th * f, dtype=jnp.int32)
    rows_in = jnp.arange(th, dtype=jnp.int32)
    A = (rows_out[:, None] // f == rows_in[None, :]).astype(dt)                 # (th*f, th)
    cols_in = jnp.arange(tw, dtype=jnp.int32)
    cols_out = jnp.arange(tw * f, dtype=jnp.int32)
    Bm = (cols_in[:, None] == cols_out[None, :] // f).astype(dt)
    Bm = Bm * jnp.asarray(gain, dt)                                             # (tw, tw*f)

    xp = x.reshape(P, H, W)                      # free reshape (contiguous)
    grid = (P // cp, H // th, W // tw)
    kernel = functools.partial(_upscale_kernel, cp=cp)

    tiles = (P // cp) * (H // th) * (W // tw) * cp
    flops = tiles * (2 * th * tw * (tw * f) + 2 * (th * f) * th * (tw * f))
    bytes_accessed = (xp.size + P * Hf * Wf) * esize + (A.size + Bm.size) * esize

    out = pl.pallas_call(
        kernel,
        out_shape=jax.ShapeDtypeStruct((P, Hf, Wf), dt),
        grid_spec=pltpu.PrefetchScalarGridSpec(
            num_scalar_prefetch=0,
            grid=grid,
            in_specs=[
                pl.BlockSpec((cp, th, tw), lambda p, h, w: (p, h, w)),     # x tile
                pl.BlockSpec((th * f, th), lambda p, h, w: (0, 0)),        # A (constant)
                pl.BlockSpec((tw, tw * f), lambda p, h, w: (0, 0)),        # Bm (constant)
            ],
            out_specs=pl.BlockSpec((cp, th * f, tw * f), lambda p, h, w: (p, h, w)),
        ),
        compiler_params=pltpu.CompilerParams(
            dimension_semantics=("parallel", "parallel", "parallel"),
        ),
        cost_estimate=pl.CostEstimate(
            flops=int(flops), transcendentals=0, bytes_accessed=int(bytes_accessed)),
    )(xp, A, Bm)

    return out.reshape(N, C, Hf, Wf)             # free reshape


def _reference(x, factor, gain):
    """Pure-JAX mirror of the PyTorch Upscale2d.forward."""
    if gain != 1.0:
        x = x * gain
    if factor > 1:
        n, c, h, w = x.shape
        x = jnp.broadcast_to(x[:, :, :, None, :, None], (n, c, h, factor, w, factor))
        x = x.reshape(n, c, h * factor, w * factor)
    return x


if __name__ == "__main__":
    key = jax.random.PRNGKey(0)
    x = jax.random.normal(key, (2, 4, 16, 16), dtype=jnp.float32)

    # Default module config: factor=2, gain=1.0
    out = jax.block_until_ready(upscale2d_pallas(x, factor=2, gain=1.0))
    ref = _reference(x, 2, 1.0)
    assert out.shape == (2, 4, 32, 32)
    assert jnp.allclose(out, ref, atol=1e-6, rtol=1e-6), "mismatch vs reference (gain=1)"

    # Gain path (same compiled kernel; gain is folded into the Bm data).
    out2 = jax.block_until_ready(upscale2d_pallas(x, factor=2, gain=2.0))
    ref2 = _reference(x, 2, 2.0)
    assert jnp.allclose(out2, ref2, atol=1e-6, rtol=1e-6), "mismatch vs reference (gain=2)"

    print("KERNEL_OK")
</pallas_src>

<mosaic_0001>
module attributes {stable_mosaic.version = 11 : i64} {
  func.func @_upscale_kernel(%arg0: i32, %arg1: i32, %arg2: i32, %arg3: memref<8x16x16xf32, #tpu.memory_space<vmem>>, %arg4: memref<32x16xf32, #tpu.memory_space<vmem>>, %arg5: memref<16x32xf32, #tpu.memory_space<vmem>>, %arg6: memref<8x32x32xf32, #tpu.memory_space<vmem>>) attributes {dimension_semantics = [#tpu.dimension_semantics<parallel>, #tpu.dimension_semantics<parallel>, #tpu.dimension_semantics<parallel>], iteration_bounds = array<i64: 1, 1, 1>, scalar_prefetch = 0 : i64, scratch_operands = 0 : i64, tpu.core_type = #tpu.core_type<tc>, window_params = [{transform_indices = @transform_0, window_bounds = array<i64: 8, 16, 16>}, {pipeline_mode = #tpu.pipeline_mode<synchronous>, transform_indices = @transform_1, window_bounds = array<i64: 32, 16>}, {pipeline_mode = #tpu.pipeline_mode<synchronous>, transform_indices = @transform_2, window_bounds = array<i64: 16, 32>}, {transform_indices = @transform_3, window_bounds = array<i64: 8, 32, 32>}]} {
    %c0 = arith.constant 0 : index
    %c0_0 = arith.constant 0 : index
    %0 = vector.load %arg4[%c0, %c0_0] : memref<32x16xf32, #tpu.memory_space<vmem>>, vector<32x16xf32>
    %c0_1 = arith.constant 0 : index
    %c0_2 = arith.constant 0 : index
    %1 = vector.load %arg5[%c0_1, %c0_2] : memref<16x32xf32, #tpu.memory_space<vmem>>, vector<16x32xf32>
    %c0_3 = arith.constant 0 : index
    %c0_4 = arith.constant 0 : index
    %c0_5 = arith.constant 0 : index
    %2 = vector.load %arg3[%c0_3, %c0_4, %c0_5] : memref<8x16x16xf32, #tpu.memory_space<vmem>>, vector<1x16x16xf32>
    %3 = vector.shape_cast %2 : vector<1x16x16xf32> to vector<16x16xf32>
    %cst = arith.constant dense<0.000000e+00> : vector<16x32xf32>
    %4 = tpu.matmul %3, %1, %cst {dimension_numbers = #tpu.dot_dimension_numbers<[1], [0], [0], [1], [0, 0, 1, 1], [], []>} : vector<16x16xf32>, vector<16x32xf32>, vector<16x32xf32> -> vector<16x32xf32>
    %cst_6 = arith.constant dense<0.000000e+00> : vector<32x32xf32>
    %5 = tpu.matmul %0, %4, %cst_6 {dimension_numbers = #tpu.dot_dimension_numbers<[1], [0], [0], [1], [0, 0, 1, 1], [], []>} : vector<32x16xf32>, vector<16x32xf32>, vector<32x32xf32> -> vector<32x32xf32>
    %c0_7 = arith.constant 0 : index
    %c0_8 = arith.constant 0 : index
    %c0_9 = arith.constant 0 : index
    %6 = vector.load %arg6[%c0_7, %c0_8, %c0_9] : memref<8x32x32xf32, #tpu.memory_space<vmem>>, vector<1x32x32xf32>
    %7 = vector.shape_cast %6 : vector<1x32x32xf32> to vector<32x32xf32>
    %8 = vector.shape_cast %5 : vector<32x32xf32> to vector<1x32x32xf32>
    tpu.vector_store %arg6[%c0_7, %c0_8, %c0_9], %8 {strides = array<i32>} : memref<8x32x32xf32, #tpu.memory_space<vmem>>, vector<1x32x32xf32>,
    %c1 = arith.constant 1 : index
    %c0_10 = arith.constant 0 : index
    %c0_11 = arith.constant 0 : index
    %9 = vector.load %arg3[%c1, %c0_10, %c0_11] : memref<8x16x16xf32, #tpu.memory_space<vmem>>, vector<1x16x16xf32>
    %10 = vector.shape_cast %9 : vector<1x16x16xf32> to vector<16x16xf32>
    %cst_12 = arith.constant dense<0.000000e+00> : vector<16x32xf32>
    %11 = tpu.matmul %10, %1, %cst_12 {dimension_numbers = #tpu.dot_dimension_numbers<[1], [0], [0], [1], [0, 0, 1, 1], [], []>} : vector<16x16xf32>, vector<16x32xf32>, vector<16x32xf32> -> vector<16x32xf32>
    %cst_13 = arith.constant dense<0.000000e+00> : vector<32x32xf32>
    %12 = tpu.matmul %0, %11, %cst_13 {dimension_numbers = #tpu.dot_dimension_numbers<[1], [0], [0], [1], [0, 0, 1, 1], [], []>} : vector<32x16xf32>, vector<16x32xf32>, vector<32x32xf32> -> vector<32x32xf32>
    %c1_14 = arith.constant 1 : index
    %c0_15 = arith.constant 0 : index
    %c0_16 = arith.constant 0 : index
    %13 = vector.load %arg6[%c1_14, %c0_15, %c0_16] : memref<8x32x32xf32, #tpu.memory_space<vmem>>, vector<1x32x32xf32>
    %14 = vector.shape_cast %13 : vector<1x32x32xf32> to vector<32x32xf32>
    %15 = vector.shape_cast %12 : vector<32x32xf32> to vector<1x32x32xf32>
    tpu.vector_store %arg6[%c1_14, %c0_15, %c0_16], %15 {strides = array<i32>} : memref<8x32x32xf32, #tpu.memory_space<vmem>>, vector<1x32x32xf32>,
    %c2 = arith.constant 2 : index
    %c0_17 = arith.constant 0 : index
    %c0_18 = arith.constant 0 : index
    %16 = vector.load %arg3[%c2, %c0_17, %c0_18] : memref<8x16x16xf32, #tpu.memory_space<vmem>>, vector<1x16x16xf32>
    %17 = vector.shape_cast %16 : vector<1x16x16xf32> to vector<16x16xf32>
    %cst_19 = arith.constant dense<0.000000e+00> : vector<16x32xf32>
    %18 = tpu.matmul %17, %1, %cst_19 {dimension_numbers = #tpu.dot_dimension_numbers<[1], [0], [0], [1], [0, 0, 1, 1], [], []>} : vector<16x16xf32>, vector<16x32xf32>, vector<16x32xf32> -> vector<16x32xf32>
    %cst_20 = arith.constant dense<0.000000e+00> : vector<32x32xf32>
    %19 = tpu.matmul %0, %18, %cst_20 {dimension_numbers = #tpu.dot_dimension_numbers<[1], [0], [0], [1], [0, 0, 1, 1], [], []>} : vector<32x16xf32>, vector<16x32xf32>, vector<32x32xf32> -> vector<32x32xf32>
    %c2_21 = arith.constant 2 : index
    %c0_22 = arith.constant 0 : index
    %c0_23 = arith.constant 0 : index
    %20 = vector.load %arg6[%c2_21, %c0_22, %c0_23] : memref<8x32x32xf32, #tpu.memory_space<vmem>>, vector<1x32x32xf32>
    %21 = vector.shape_cast %20 : vector<1x32x32xf32> to vector<32x32xf32>
    %22 = vector.shape_cast %19 : vector<32x32xf32> to vector<1x32x32xf32>
    tpu.vector_store %arg6[%c2_21, %c0_22, %c0_23], %22 {strides = array<i32>} : memref<8x32x32xf32, #tpu.memory_space<vmem>>, vector<1x32x32xf32>,
    %c3 = arith.constant 3 : index
    %c0_24 = arith.constant 0 : index
    %c0_25 = arith.constant 0 : index
    %23 = vector.load %arg3[%c3, %c0_24, %c0_25] : memref<8x16x16xf32, #tpu.memory_space<vmem>>, vector<1x16x16xf32>
    %24 = vector.shape_cast %23 : vector<1x16x16xf32> to vector<16x16xf32>
    %cst_26 = arith.constant dense<0.000000e+00> : vector<16x32xf32>
    %25 = tpu.matmul %24, %1, %cst_26 {dimension_numbers = #tpu.dot_dimension_numbers<[1], [0], [0], [1], [0, 0, 1, 1], [], []>} : vector<16x16xf32>, vector<16x32xf32>, vector<16x32xf32> -> vector<16x32xf32>
    %cst_27 = arith.constant dense<0.000000e+00> : vector<32x32xf32>
    %26 = tpu.matmul %0, %25, %cst_27 {dimension_numbers = #tpu.dot_dimension_numbers<[1], [0], [0], [1], [0, 0, 1, 1], [], []>} : vector<32x16xf32>, vector<16x32xf32>, vector<32x32xf32> -> vector<32x32xf32>
    %c3_28 = arith.constant 3 : index
    %c0_29 = arith.constant 0 : index
    %c0_30 = arith.constant 0 : index
    %27 = vector.load %arg6[%c3_28, %c0_29, %c0_30] : memref<8x32x32xf32, #tpu.memory_space<vmem>>, vector<1x32x32xf32>
    %28 = vector.shape_cast %27 : vector<1x32x32xf32> to vector<32x32xf32>
    %29 = vector.shape_cast %26 : vector<32x32xf32> to vector<1x32x32xf32>
    tpu.vector_store %arg6[%c3_28, %c0_29, %c0_30], %29 {strides = array<i32>} : memref<8x32x32xf32, #tpu.memory_space<vmem>>, vector<1x32x32xf32>,
    %c4 = arith.constant 4 : index
    %c0_31 = arith.constant 0 : index
    %c0_32 = arith.constant 0 : index
    %30 = vector.load %arg3[%c4, %c0_31, %c0_32] : memref<8x16x16xf32, #tpu.memory_space<vmem>>, vector<1x16x16xf32>
    %31 = vector.shape_cast %30 : vector<1x16x16xf32> to vector<16x16xf32>
    %cst_33 = arith.constant dense<0.000000e+00> : vector<16x32xf32>
    %32 = tpu.matmul %31, %1, %cst_33 {dimension_numbers = #tpu.dot_dimension_numbers<[1], [0], [0], [1], [0, 0, 1, 1], [], []>} : vector<16x16xf32>, vector<16x32xf32>, vector<16x32xf32> -> vector<16x32xf32>
    %cst_34 = arith.constant dense<0.000000e+00> : vector<32x32xf32>
    %33 = tpu.matmul %0, %32, %cst_34 {dimension_numbers = #tpu.dot_dimension_numbers<[1], [0], [0], [1], [0, 0, 1, 1], [], []>} : vector<32x16xf32>, vector<16x32xf32>, vector<32x32xf32> -> vector<32x32xf32>
    %c4_35 = arith.constant 4 : index
    %c0_36 = arith.constant 0 : index
    %c0_37 = arith.constant 0 : index
    %34 = vector.load %arg6[%c4_35, %c0_36, %c0_37] : memref<8x32x32xf32, #tpu.memory_space<vmem>>, vector<1x32x32xf32>
    %35 = vector.shape_cast %34 : vector<1x32x32xf32> to vector<32x32xf32>
    %36 = vector.shape_cast %33 : vector<32x32xf32> to vector<1x32x32xf32>
    tpu.vector_store %arg6[%c4_35, %c0_36, %c0_37], %36 {strides = array<i32>} : memref<8x32x32xf32, #tpu.memory_space<vmem>>, vector<1x32x32xf32>,
    %c5 = arith.constant 5 : index
    %c0_38 = arith.constant 0 : index
    %c0_39 = arith.constant 0 : index
    %37 = vector.load %arg3[%c5, %c0_38, %c0_39] : memref<8x16x16xf32, #tpu.memory_space<vmem>>, vector<1x16x16xf32>
    %38 = vector.shape_cast %37 : vector<1x16x16xf32> to vector<16x16xf32>
    %cst_40 = arith.constant dense<0.000000e+00> : vector<16x32xf32>
    %39 = tpu.matmul %38, %1, %cst_40 {dimension_numbers = #tpu.dot_dimension_numbers<[1], [0], [0], [1], [0, 0, 1, 1], [], []>} : vector<16x16xf32>, vector<16x32xf32>, vector<16x32xf32> -> vector<16x32xf32>
    %cst_41 = arith.constant dense<0.000000e+00> : vector<32x32xf32>
    %40 = tpu.matmul %0, %39, %cst_41 {dimension_numbers = #tpu.dot_dimension_numbers<[1], [0], [0], [1], [0, 0, 1, 1], [], []>} : vector<32x16xf32>, vector<16x32xf32>, vector<32x32xf32> -> vector<32x32xf32>
    %c5_42 = arith.constant 5 : index
    %c0_43 = arith.constant 0 : index
    %c0_44 = arith.constant 0 : index
    %41 = vector.load %arg6[%c5_42, %c0_43, %c0_44] : memref<8x32x32xf32, #tpu.memory_space<vmem>>, vector<1x32x32xf32>
    %42 = vector.shape_cast %41 : vector<1x32x32xf32> to vector<32x32xf32>
    %43 = vector.shape_cast %40 : vector<32x32xf32> to vector<1x32x32xf32>
    tpu.vector_store %arg6[%c5_42, %c0_43, %c0_44], %43 {strides = array<i32>} : memref<8x32x32xf32, #tpu.memory_space<vmem>>, vector<1x32x32xf32>,
    %c6 = arith.constant 6 : index
    %c0_45 = arith.constant 0 : index
    %c0_46 = arith.constant 0 : index
    %44 = vector.load %arg3[%c6, %c0_45, %c0_46] : memref<8x16x16xf32, #tpu.memory_space<vmem>>, vector<1x16x16xf32>
    %45 = vector.shape_cast %44 : vector<1x16x16xf32> to vector<16x16xf32>
    %cst_47 = arith.constant dense<0.000000e+00> : vector<16x32xf32>
    %46 = tpu.matmul %45, %1, %cst_47 {dimension_numbers = #tpu.dot_dimension_numbers<[1], [0], [0], [1], [0, 0, 1, 1], [], []>} : vector<16x16xf32>, vector<16x32xf32>, vector<16x32xf32> -> vector<16x32xf32>
    %cst_48 = arith.constant dense<0.000000e+00> : vector<32x32xf32>
    %47 = tpu.matmul %0, %46, %cst_48 {dimension_numbers = #tpu.dot_dimension_numbers<[1], [0], [0], [1], [0, 0, 1, 1], [], []>} : vector<32x16xf32>, vector<16x32xf32>, vector<32x32xf32> -> vector<32x32xf32>
    %c6_49 = arith.constant 6 : index
    %c0_50 = arith.constant 0 : index
    %c0_51 = arith.constant 0 : index
    %48 = vector.load %arg6[%c6_49, %c0_50, %c0_51] : memref<8x32x32xf32, #tpu.memory_space<vmem>>, vector<1x32x32xf32>
    %49 = vector.shape_cast %48 : vector<1x32x32xf32> to vector<32x32xf32>
    %50 = vector.shape_cast %47 : vector<32x32xf32> to vector<1x32x32xf32>
    tpu.vector_store %arg6[%c6_49, %c0_50, %c0_51], %50 {strides = array<i32>} : memref<8x32x32xf32, #tpu.memory_space<vmem>>, vector<1x32x32xf32>,
    %c7 = arith.constant 7 : index
    %c0_52 = arith.constant 0 : index
    %c0_53 = arith.constant 0 : index
    %51 = vector.load %arg3[%c7, %c0_52, %c0_53] : memref<8x16x16xf32, #tpu.memory_space<vmem>>, vector<1x16x16xf32>
    %52 = vector.shape_cast %51 : vector<1x16x16xf32> to vector<16x16xf32>
    %cst_54 = arith.constant dense<0.000000e+00> : vector<16x32xf32>
    %53 = tpu.matmul %52, %1, %cst_54 {dimension_numbers = #tpu.dot_dimension_numbers<[1], [0], [0], [1], [0, 0, 1, 1], [], []>} : vector<16x16xf32>, vector<16x32xf32>, vector<16x32xf32> -> vector<16x32xf32>
    %cst_55 = arith.constant dense<0.000000e+00> : vector<32x32xf32>
    %54 = tpu.matmul %0, %53, %cst_55 {dimension_numbers = #tpu.dot_dimension_numbers<[1], [0], [0], [1], [0, 0, 1, 1], [], []>} : vector<32x16xf32>, vector<16x32xf32>, vector<32x32xf32> -> vector<32x32xf32>
    %c7_56 = arith.constant 7 : index
    %c0_57 = arith.constant 0 : index
    %c0_58 = arith.constant 0 : index
    %55 = vector.load %arg6[%c7_56, %c0_57, %c0_58] : memref<8x32x32xf32, #tpu.memory_space<vmem>>, vector<1x32x32xf32>
    %56 = vector.shape_cast %55 : vector<1x32x32xf32> to vector<32x32xf32>
    %57 = vector.shape_cast %54 : vector<32x32xf32> to vector<1x32x32xf32>
    tpu.vector_store %arg6[%c7_56, %c0_57, %c0_58], %57 {strides = array<i32>} : memref<8x32x32xf32, #tpu.memory_space<vmem>>, vector<1x32x32xf32>,
    return
  }
  func.func @transform_0(%arg0: i32, %arg1: i32, %arg2: i32) -> (i32, i32, i32) {
    %c0_i32 = arith.constant 0 : i32
    return %arg0, %arg1, %arg2 : i32, i32, i32
  }
  func.func @transform_1(%arg0: i32, %arg1: i32, %arg2: i32) -> (i32, i32) {
    %c0_i32 = arith.constant 0 : i32
    %c0_i32_0 = arith.constant 0 : i32
    %c0_i32_1 = arith.constant 0 : i32
    return %c0_i32, %c0_i32_0 : i32, i32
  }
  func.func @transform_2(%arg0: i32, %arg1: i32, %arg2: i32) -> (i32, i32) {
    %c0_i32 = arith.constant 0 : i32
    %c0_i32_0 = arith.constant 0 : i32
    %c0_i32_1 = arith.constant 0 : i32
    return %c0_i32, %c0_i32_0 : i32, i32
  }
  func.func @transform_3(%arg0: i32, %arg1: i32, %arg2: i32) -> (i32, i32, i32) {
    %c0_i32 = arith.constant 0 : i32
    return %arg0, %arg1, %arg2 : i32, i32, i32
  }
}

</mosaic_0001>

<bundles_post_ra>
// kernel: tpu_custom_call.1
= control target key start
LH: loop header
LB: loop body
LE: loop exit
PB: predicated region body
PF: predicated region fallthrough
CT: control target
= control target key end

     0   :  { %8 = vsyncpa [#allocation3], 0  ;;  %s1978_s0 = inlined_call_operand.hbm [shape: f32[8,16,16], index: 0, kind: input, shape index: {}]   ;;  %s1979_s1 = inlined_call_operand.vmem [shape: f32[32,16], index: 1, kind: input, shape index: {}]   ;;  %s1980_s2 = inlined_call_operand.vmem [shape: f32[16,32], index: 2, kind: input, shape index: {}]   ;;  %s1981_s3 = inlined_call_operand.hbm [shape: f32[8,32,32], index: 3, kind: output, shape index: {}]  }
   0x1   :  { %9 = vsyncpa [#allocation4], 0  ;;  %s1768_s12 = smov [#allocation2]  }
   0x2   :  { %s15_s13 = sshll.u32 %s1768_s12, 4  ;;  %s16_s13 = int_to_ptr.vmem [resolvable:$true] %s15_s13 }
   0x3   :  { %s1732_s14 = scalar_lea.vmem %s16_s13, 2048  ;;  %p1737_p1 = scmp.lt.s32.totalorder %s16_s13, %s16_s13 }
   0x4   :  { %p1733_p0 = scmp.ne.s32.totalorder %s16_s13, %s1732_s14  ;;  %p1738_p2 = scmp.lt.s32.totalorder %s1732_s14, %s1732_s14 }
   0x6   :  { %p1739_p3 = por %p1738_p2, %p1737_p1 }
   0x8   :  { %p1740_p4 = pnand %p1739_p3, %p1733_p0 }
   0xa   :  { %1743 = shalt.err (!%p1740_p4)
}
   0xb   :  { %s1769_s15 = smov 128   ;;  %s1770_s16 = smov 8  }
   0xc   :  { %21 = dma.hbm_to_vmem [thread:$0]  %s1978_s0, 2048, %s16_s13, [#allocation3], %s1769_s15, %s1769_s15, %s1770_s16  }
   0xd   :  { %1764 = dma.done.wait [#allocation3], 2048  }
   0xe   :  { %1765 = vsyncadd [#allocation3], 4294965248  ;;  %v1801_v0 = vld [vmem:[%s1980_s2 + $0x8] sm:$0xff]  ;;  %v1806_v1 = vld [vmem:[%s1980_s2] sm:$0xff]  ;;  %vm37_vm0 = vcmask 130048   ;;  %vm216_vm1 = vcmask 261120  }
   0xf   :  { %1584 = vmatprep.subr.mxu1 %v1801_v0  ;;  %1601 = vmatprep.subr.mxu0 %v1801_v0  ;;  %v35_v2 = vld [vmem:[#allocation2] sm:$0xff]  ;;  %v222_v3 = vld [vmem:[#allocation2 + $0x10] sm:$0xff]  ;;  %v36_v4 = vld [vmem:[#allocation2 + $0x8] sm:$0xff] }
  0x10   :  { %1585 = vmatpush3.msra.mxu1 %v1801_v0  ;;  %1602 = vmatpush3.msra.mxu0 %v1801_v0  ;;  %v223_v5 = vld [vmem:[#allocation2 + $0x18] sm:$0xff]  ;;  %v1823_v6 = vld [vmem:[%s1979_s1] sm:$0xff]  ;;  %v1832_v11 = vld [vmem:[%s1979_s1 + $0x8] sm:$0xff] }
  0x11   :  { %1586 = vmatprep.subr.mxu1 %v1806_v1  ;;  %1603 = vmatprep.subr.mxu0 %v1806_v1  ;;  %v1841_v12 = vld [vmem:[%s1979_s1 + $0x10] sm:$0xff]  ;;  %v1848_v13 = vld [vmem:[%s1979_s1 + $0x18] sm:$0xff]  ;;  %v396_v14 = vld [vmem:[#allocation2 + $0x20] sm:$0xff]  ;;  %s1771_s1 = smov [#allocation5]  }
  0x12   :  { %1587 = vmatpush3.msra.mxu1 %v1806_v1  ;;  %1588 = vmatprep.mubr.msk.f32.mxu1 %vm37_vm0, %v35_v2  ;;  %v570_v15 = vld [vmem:[#allocation2 + $0x30] sm:$0xff]  ;;  %v397_v16 = vld [vmem:[#allocation2 + $0x28] sm:$0xff]  ;;  %v571_v17 = vld [vmem:[#allocation2 + $0x38] sm:$0xff]  ;;  %s1444_s29 = sshll.u32 %s1771_s1, 4  ;;  %s1445_s29 = int_to_ptr.vmem [resolvable:$true] %s1444_s29 }
  0x13   :  { %1604 = vmatpush3.msra.mxu0 %v1806_v1  ;;  %1605 = vmatprep.mubr.msk.f32.mxu0 %vm37_vm0, %v222_v3  ;;  %v744_v30 = vld [vmem:[#allocation2 + $0x40] sm:$0xff]  ;;  %v918_v31 = vld [vmem:[#allocation2 + $0x50] sm:$0xff]  ;;  %v745_v32 = vld [vmem:[#allocation2 + $0x48] sm:$0xff]  ;;  %s1744_s30 = scalar_lea.vmem %s1445_s29, 4096  ;;  %p1749_p6 = scmp.lt.s32.totalorder %s1445_s29, %s1445_s29 }
  0x14   :  { %1589 = vmatmul.mubr.msk.f32.vlgmr.msra.gmra.mxu1 %vm37_vm0, %v36_v4  ;;  %1606 = vmatmul.mubr.msk.f32.vlgmr.msra.gmra.mxu0 %vm37_vm0, %v223_v5  ;;  %v919_v33 = vld [vmem:[#allocation2 + $0x58] sm:$0xff]  ;;  %v1092_v46 = vld [vmem:[#allocation2 + $0x60] sm:$0xff]  ;;  %v1266_v47 = vld [vmem:[#allocation2 + $0x70] sm:$0xff]  ;;  %p1745_p5 = scmp.ne.s32.totalorder %s1445_s29, %s1744_s30  ;;  %p1750_p7 = scmp.lt.s32.totalorder %s1744_s30, %s1744_s30 }
  0x15   :  { %1595 = vmatprep.mubr.msk.f32.mxu1 %vm37_vm0, %v1823_v6  ;;  %1612 = vmatprep.mubr.msk.f32.mxu0 %vm37_vm0, %v1823_v6  ;;  %v1093_v48 = vld [vmem:[#allocation2 + $0x68] sm:$0xff]  ;;  %v1267_v49 = vld [vmem:[#allocation2 + $0x78] sm:$0xff] }
  0x16   :  { %p1751_p8 = por %p1750_p7, %p1749_p6 }
  0x18   :  { %p1752_p9 = pnand %p1751_p8, %p1745_p5 }
  0xd4   :  { %v1590_v7 = vpop.f32.mrf.mxu1  ;;  %v1607_v8 = vpop.f32.mrf.mxu0 }
  0xd5   :  { %1591 = vmatprep.subr.mxu1 %v1590_v7  ;;  %1608 = vmatprep.subr.mxu0 %v1607_v8 }
  0xd6   :  { %v110_v9 = vpop.f32.mrf.mxu1  ;;  %1592 = vmatpush3.msra.mxu1 %v1590_v7  ;;  %v296_v10 = vpop.f32.mrf.mxu0  ;;  %1609 = vmatpush3.msra.mxu0 %v1607_v8 }
  0xd7   :  { %1593 = vmatprep.subr.mxu1 %v110_v9  ;;  %1610 = vmatprep.subr.mxu0 %v296_v10 }
  0xd8   :  { %1594 = vmatpush3.msra.mxu1 %v110_v9  ;;  %1611 = vmatpush3.msra.mxu0 %v296_v10 }
  0xd9   :  { %1596 = vmatmul.mubr.msk.f32.vlgmr.msra.gmra.mxu1 %vm37_vm0, %v1832_v11  ;;  %1613 = vmatmul.mubr.msk.f32.vlgmr.msra.gmra.mxu0 %vm37_vm0, %v1832_v11 }
  0xda   :  { %1618 = vmatprep.subr.mxu1 %v1801_v0  ;;  %1635 = vmatprep.subr.mxu0 %v1801_v0 }
  0xdb   :  { %1619 = vmatpush3.msra.mxu1 %v1801_v0  ;;  %1636 = vmatpush3.msra.mxu0 %v1801_v0 }
  0xdc   :  { %1598 = vmatprep.mubr.msk.f32.mxu1 %vm37_vm0, %v1841_v12  ;;  %1615 = vmatprep.mubr.msk.f32.mxu0 %vm37_vm0, %v1841_v12 }
  0xdd   :  { %1599 = vmatmul.mubr.msk.f32.gmra.mxu1 %vm37_vm0, %v1848_v13  ;;  %1616 = vmatmul.mubr.msk.f32.gmra.mxu0 %vm37_vm0, %v1848_v13 }
  0xde   :  { %1620 = vmatprep.subr.mxu1 %v1806_v1  ;;  %1637 = vmatprep.subr.mxu0 %v1806_v1 }
  0xdf   :  { %1621 = vmatpush3.msra.mxu1 %v1806_v1  ;;  %1638 = vmatpush3.msra.mxu0 %v1806_v1 }
  0xe0   :  { %1622 = vmatprep.mubr.msk.f32.mxu1 %vm37_vm0, %v396_v14  ;;  %1639 = vmatprep.mubr.msk.f32.mxu0 %vm37_vm0, %v570_v15 }
  0xe1   :  { %1623 = vmatmul.mubr.msk.f32.vlgmr.msra.gmra.mxu1 %vm37_vm0, %v397_v16  ;;  %1640 = vmatmul.mubr.msk.f32.vlgmr.msra.gmra.mxu0 %vm37_vm0, %v571_v17 }
  0xe2   :  { %1629 = vmatprep.mubr.msk.f32.mxu1 %vm37_vm0, %v1823_v6  ;;  %1646 = vmatprep.mubr.msk.f32.mxu0 %vm37_vm0, %v1823_v6 }
 0x199   :  { %v1597_v18 = vpop.f32.mrf.mxu1  ;;  %v1614_v19 = vpop.f32.mrf.mxu0 }
 0x19a   :  { %218 = vst.msk [vmem:[#allocation5 + $0x8] sm:$0xff] %vm216_vm1, %v1597_v18  ;;  %392 = vst.msk [vmem:[#allocation5 + $0x28] sm:$0xff] %vm216_vm1, %v1614_v19 }
 0x19b   :  { %v197_v20 = vpop.f32.mrf.mxu1  ;;  %v371_v21 = vpop.f32.mrf.mxu0 }
 0x19c   :  { %217 = vst.msk [vmem:[#allocation5] sm:$0xff] %vm216_vm1, %v197_v20  ;;  %391 = vst.msk [vmem:[#allocation5 + $0x20] sm:$0xff] %vm216_vm1, %v371_v21 }
 0x19d   :  { %v1600_v22 = vpop.f32.mrf.mxu1  ;;  %v1617_v23 = vpop.f32.mrf.mxu0 }
 0x19e   :  { %220 = vst.msk [vmem:[#allocation5 + $0x18] sm:$0xff] %vm216_vm1, %v1600_v22  ;;  %394 = vst.msk [vmem:[#allocation5 + $0x38] sm:$0xff] %vm216_vm1, %v1617_v23 }
 0x19f   :  { %v207_v24 = vpop.f32.mrf.mxu1  ;;  %v381_v25 = vpop.f32.mrf.mxu0 }
 0x1a0   :  { %219 = vst.msk [vmem:[#allocation5 + $0x10] sm:$0xff] %vm216_vm1, %v207_v24  ;;  %393 = vst.msk [vmem:[#allocation5 + $0x30] sm:$0xff] %vm216_vm1, %v381_v25 }
 0x1a1   :  { %v1624_v26 = vpop.f32.mrf.mxu1  ;;  %v1641_v27 = vpop.f32.mrf.mxu0 }
 0x1a2   :  { %1625 = vmatprep.subr.mxu1 %v1624_v26  ;;  %1642 = vmatprep.subr.mxu0 %v1641_v27 }
 0x1a3   :  { %v470_v28 = vpop.f32.mrf.mxu1  ;;  %1626 = vmatpush3.msra.mxu1 %v1624_v26  ;;  %v644_v29 = vpop.f32.mrf.mxu0  ;;  %1643 = vmatpush3.msra.mxu0 %v1641_v27 }
 0x1a4   :  { %1627 = vmatprep.subr.mxu1 %v470_v28  ;;  %1644 = vmatprep.subr.mxu0 %v644_v29 }
 0x1a5   :  { %1628 = vmatpush3.msra.mxu1 %v470_v28  ;;  %1645 = vmatpush3.msra.mxu0 %v644_v29 }
 0x1a6   :  { %1630 = vmatmul.mubr.msk.f32.vlgmr.msra.gmra.mxu1 %vm37_vm0, %v1832_v11  ;;  %1647 = vmatmul.mubr.msk.f32.vlgmr.msra.gmra.mxu0 %vm37_vm0, %v1832_v11 }
 0x1a7   :  { %1652 = vmatprep.subr.mxu1 %v1801_v0  ;;  %1669 = vmatprep.subr.mxu0 %v1801_v0 }
 0x1a8   :  { %1653 = vmatpush3.msra.mxu1 %v1801_v0  ;;  %1670 = vmatpush3.msra.mxu0 %v1801_v0 }
 0x1a9   :  { %1632 = vmatprep.mubr.msk.f32.mxu1 %vm37_vm0, %v1841_v12  ;;  %1649 = vmatprep.mubr.msk.f32.mxu0 %vm37_vm0, %v1841_v12 }
 0x1aa   :  { %1633 = vmatmul.mubr.msk.f32.gmra.mxu1 %vm37_vm0, %v1848_v13  ;;  %1650 = vmatmul.mubr.msk.f32.gmra.mxu0 %vm37_vm0, %v1848_v13 }
 0x1ab   :  { %1654 = vmatprep.subr.mxu1 %v1806_v1  ;;  %1671 = vmatprep.subr.mxu0 %v1806_v1 }
 0x1ac   :  { %1655 = vmatpush3.msra.mxu1 %v1806_v1  ;;  %1672 = vmatpush3.msra.mxu0 %v1806_v1 }
 0x1ad   :  { %1656 = vmatprep.mubr.msk.f32.mxu1 %vm37_vm0, %v744_v30  ;;  %1673 = vmatprep.mubr.msk.f32.mxu0 %vm37_vm0, %v918_v31 }
 0x1ae   :  { %1657 = vmatmul.mubr.msk.f32.vlgmr.msra.gmra.mxu1 %vm37_vm0, %v745_v32  ;;  %1674 = vmatmul.mubr.msk.f32.vlgmr.msra.gmra.mxu0 %vm37_vm0, %v919_v33 }
 0x1af   :  { %1663 = vmatprep.mubr.msk.f32.mxu1 %vm37_vm0, %v1823_v6  ;;  %1680 = vmatprep.mubr.msk.f32.mxu0 %vm37_vm0, %v1823_v6 }
 0x266   :  { %v1631_v34 = vpop.f32.mrf.mxu1  ;;  %v1648_v35 = vpop.f32.mrf.mxu0 }
 0x267   :  { %566 = vst.msk [vmem:[#allocation5 + $0x48] sm:$0xff] %vm216_vm1, %v1631_v34  ;;  %740 = vst.msk [vmem:[#allocation5 + $0x68] sm:$0xff] %vm216_vm1, %v1648_v35 }
 0x268   :  { %v545_v36 = vpop.f32.mrf.mxu1  ;;  %v719_v37 = vpop.f32.mrf.mxu0 }
 0x269   :  { %565 = vst.msk [vmem:[#allocation5 + $0x40] sm:$0xff] %vm216_vm1, %v545_v36  ;;  %739 = vst.msk [vmem:[#allocation5 + $0x60] sm:$0xff] %vm216_vm1, %v719_v37 }
 0x26a   :  { %v1634_v38 = vpop.f32.mrf.mxu1  ;;  %v1651_v39 = vpop.f32.mrf.mxu0 }
 0x26b   :  { %568 = vst.msk [vmem:[#allocation5 + $0x58] sm:$0xff] %vm216_vm1, %v1634_v38  ;;  %742 = vst.msk [vmem:[#allocation5 + $0x78] sm:$0xff] %vm216_vm1, %v1651_v39 }
 0x26c   :  { %v555_v40 = vpop.f32.mrf.mxu1  ;;  %v729_v41 = vpop.f32.mrf.mxu0 }
 0x26d   :  { %567 = vst.msk [vmem:[#allocation5 + $0x50] sm:$0xff] %vm216_vm1, %v555_v40  ;;  %741 = vst.msk [vmem:[#allocation5 + $0x70] sm:$0xff] %vm216_vm1, %v729_v41 }
 0x26e   :  { %v1658_v42 = vpop.f32.mrf.mxu1  ;;  %v1675_v43 = vpop.f32.mrf.mxu0 }
 0x26f   :  { %1659 = vmatprep.subr.mxu1 %v1658_v42  ;;  %1676 = vmatprep.subr.mxu0 %v1675_v43 }
 0x270   :  { %v818_v44 = vpop.f32.mrf.mxu1  ;;  %1660 = vmatpush3.msra.mxu1 %v1658_v42  ;;  %v992_v45 = vpop.f32.mrf.mxu0  ;;  %1677 = vmatpush3.msra.mxu0 %v1675_v43 }
 0x271   :  { %1661 = vmatprep.subr.mxu1 %v818_v44  ;;  %1678 = vmatprep.subr.mxu0 %v992_v45 }
 0x272   :  { %1662 = vmatpush3.msra.mxu1 %v818_v44  ;;  %1679 = vmatpush3.msra.mxu0 %v992_v45 }
 0x273   :  { %1664 = vmatmul.mubr.msk.f32.vlgmr.msra.gmra.mxu1 %vm37_vm0, %v1832_v11  ;;  %1681 = vmatmul.mubr.msk.f32.vlgmr.msra.gmra.mxu0 %vm37_vm0, %v1832_v11 }
 0x274   :  { %1686 = vmatprep.subr.mxu1 %v1801_v0  ;;  %1703 = vmatprep.subr.mxu0 %v1801_v0 }
 0x275   :  { %1687 = vmatpush3.msra.mxu1 %v1801_v0  ;;  %1704 = vmatpush3.msra.mxu0 %v1801_v0 }
 0x276   :  { %1666 = vmatprep.mubr.msk.f32.mxu1 %vm37_vm0, %v1841_v12  ;;  %1683 = vmatprep.mubr.msk.f32.mxu0 %vm37_vm0, %v1841_v12 }
 0x277   :  { %1667 = vmatmul.mubr.msk.f32.gmra.mxu1 %vm37_vm0, %v1848_v13  ;;  %1684 = vmatmul.mubr.msk.f32.gmra.mxu0 %vm37_vm0, %v1848_v13 }
 0x278   :  { %1688 = vmatprep.subr.mxu1 %v1806_v1  ;;  %1705 = vmatprep.subr.mxu0 %v1806_v1 }
 0x279   :  { %1689 = vmatpush3.msra.mxu1 %v1806_v1  ;;  %1706 = vmatpush3.msra.mxu0 %v1806_v1 }
 0x27a   :  { %1690 = vmatprep.mubr.msk.f32.mxu1 %vm37_vm0, %v1092_v46  ;;  %1707 = vmatprep.mubr.msk.f32.mxu0 %vm37_vm0, %v1266_v47 }
 0x27b   :  { %1691 = vmatmul.mubr.msk.f32.vlgmr.msra.gmra.mxu1 %vm37_vm0, %v1093_v48  ;;  %1708 = vmatmul.mubr.msk.f32.vlgmr.msra.gmra.mxu0 %vm37_vm0, %v1267_v49 }
 0x27c   :  { %1697 = vmatprep.mubr.msk.f32.mxu1 %vm37_vm0, %v1823_v6  ;;  %1714 = vmatprep.mubr.msk.f32.mxu0 %vm37_vm0, %v1823_v6 }
 0x333   :  { %v1665_v50 = vpop.f32.mrf.mxu1  ;;  %v1682_v51 = vpop.f32.mrf.mxu0 }
 0x334   :  { %914 = vst.msk [vmem:[#allocation5 + $0x88] sm:$0xff] %vm216_vm1, %v1665_v50  ;;  %1088 = vst.msk [vmem:[#allocation5 + $0xa8] sm:$0xff] %vm216_vm1, %v1682_v51 }
 0x335   :  { %v893_v52 = vpop.f32.mrf.mxu1  ;;  %v1067_v53 = vpop.f32.mrf.mxu0 }
 0x336   :  { %913 = vst.msk [vmem:[#allocation5 + $0x80] sm:$0xff] %vm216_vm1, %v893_v52  ;;  %1087 = vst.msk [vmem:[#allocation5 + $0xa0] sm:$0xff] %vm216_vm1, %v1067_v53 }
 0x337   :  { %v1668_v54 = vpop.f32.mrf.mxu1  ;;  %v1685_v55 = vpop.f32.mrf.mxu0 }
 0x338   :  { %916 = vst.msk [vmem:[#allocation5 + $0x98] sm:$0xff] %vm216_vm1, %v1668_v54  ;;  %1090 = vst.msk [vmem:[#allocation5 + $0xb8] sm:$0xff] %vm216_vm1, %v1685_v55 }
 0x339   :  { %v903_v56 = vpop.f32.mrf.mxu1  ;;  %v1077_v57 = vpop.f32.mrf.mxu0 }
 0x33a   :  { %915 = vst.msk [vmem:[#allocation5 + $0x90] sm:$0xff] %vm216_vm1, %v903_v56  ;;  %1089 = vst.msk [vmem:[#allocation5 + $0xb0] sm:$0xff] %vm216_vm1, %v1077_v57 }
 0x33b   :  { %v1692_v58 = vpop.f32.mrf.mxu1  ;;  %v1709_v59 = vpop.f32.mrf.mxu0 }
 0x33c   :  { %1693 = vmatprep.subr.mxu1 %v1692_v58  ;;  %1710 = vmatprep.subr.mxu0 %v1709_v59 }
 0x33d   :  { %v1166_v60 = vpop.f32.mrf.mxu1  ;;  %1694 = vmatpush3.msra.mxu1 %v1692_v58  ;;  %v1340_v61 = vpop.f32.mrf.mxu0  ;;  %1711 = vmatpush3.msra.mxu0 %v1709_v59 }
 0x33e   :  { %1695 = vmatprep.subr.mxu1 %v1166_v60  ;;  %1712 = vmatprep.subr.mxu0 %v1340_v61 }
 0x33f   :  { %1696 = vmatpush3.msra.mxu1 %v1166_v60  ;;  %1713 = vmatpush3.msra.mxu0 %v1340_v61 }
 0x340   :  { %1698 = vmatmul.mubr.msk.f32.vlgmr.msra.gmra.mxu1 %vm37_vm0, %v1832_v11  ;;  %1715 = vmatmul.mubr.msk.f32.vlgmr.msra.gmra.mxu0 %vm37_vm0, %v1832_v11 }
 0x341   :  { %1700 = vmatprep.mubr.msk.f32.mxu1 %vm37_vm0, %v1841_v12  ;;  %1717 = vmatprep.mubr.msk.f32.mxu0 %vm37_vm0, %v1841_v12 }
 0x344   :  { %1701 = vmatmul.mubr.msk.f32.gmra.mxu1 %vm37_vm0, %v1848_v13  ;;  %1718 = vmatmul.mubr.msk.f32.gmra.mxu0 %vm37_vm0, %v1848_v13 }
 0x400   :  { %v1699_v62 = vpop.f32.mrf.mxu1  ;;  %v1716_v63 = vpop.f32.mrf.mxu0 }
 0x401   :  { %1262 = vst.msk [vmem:[#allocation5 + $0xc8] sm:$0xff] %vm216_vm1, %v1699_v62  ;;  %1436 = vst.msk [vmem:[#allocation5 + $0xe8] sm:$0xff] %vm216_vm1, %v1716_v63 }
 0x402   :  { %v1241_v0 = vpop.f32.mrf.mxu1  ;;  %v1415_v1 = vpop.f32.mrf.mxu0 }
 0x403   :  { %1261 = vst.msk [vmem:[#allocation5 + $0xc0] sm:$0xff] %vm216_vm1, %v1241_v0  ;;  %1435 = vst.msk [vmem:[#allocation5 + $0xe0] sm:$0xff] %vm216_vm1, %v1415_v1 }
 0x404   :  { %v1702_v2 = vpop.f32.mrf.mxu1  ;;  %v1719_v3 = vpop.f32.mrf.mxu0 }
 0x405   :  { %1264 = vst.msk [vmem:[#allocation5 + $0xd8] sm:$0xff] %vm216_vm1, %v1702_v2  ;;  %1438 = vst.msk [vmem:[#allocation5 + $0xf8] sm:$0xff] %vm216_vm1, %v1719_v3 }
 0x406   :  { %v1251_v4 = vpop.f32.mrf.mxu1  ;;  %v1425_v5 = vpop.f32.mrf.mxu0 }
 0x407   :  { %1263 = vst.msk [vmem:[#allocation5 + $0xd0] sm:$0xff] %vm216_vm1, %v1251_v4  ;;  %1437 = vst.msk [vmem:[#allocation5 + $0xf0] sm:$0xff] %vm216_vm1, %v1425_v5 }
 0x408   :  { %1755 = shalt.err (!%p1752_p9)
}
 0x409   :  { %1450 = dma.vmem_to_hbm [thread:$0]  %s1445_s29, 4096, %s1981_s3, [#allocation4], %s1769_s15, %s1769_s15, %s1770_s16  }
 0x40a   :  { %1766 = dma.done.wait [#allocation4], 4096  }
 0x40b   :  { %1767 = vsyncadd [#allocation4], 4294963200 }
 0x40c   :  { %1454 = vsyncpa [#allocation3], 1 }
 0x40d   :  { %1455 = vsyncpa [#allocation4], 1 }

</bundles_post_ra>
